<compile_context>
chip_gen: v5e
topology: v5e:2x2
jax: 0.10.0
libtpu: 0.0.40
codegen_flags: <defaults>
</compile_context>

<pallas_src>
import math

import jax
import jax.numpy as jnp
from jax.experimental import pallas as pl
from jax.experimental.pallas import tpu as pltpu


LATENT = 3
ENC_PAD = 8            # enc output columns (3 real + 5 zero) -> tiny HBM stream
IN_FEATURES = 28 * 28


def _round_up(n, m):
    return ((n + m - 1) // m) * m


# ----------------------------------------------------------------------------
# Kernel: one batch tile (TB rows) of the full forward pass.
# Weights / biases are resident full-array VMEM blocks (constant index_map).
# ----------------------------------------------------------------------------
def _vae_kernel(
    x_ref,
    w1_ref, b1_ref,      # 784 -> 128
    w2_ref, b2_ref,      # 128 -> 32
    w3p_ref, b3p_ref,    # 32 -> ENC_PAD (zero-padded encoder head, real cols = 3)
    w34_ref, b34_ref,    # 32 -> 32 (fused w3 @ w4 decoder entry)
    w5_ref, b5_ref,      # 32 -> 128
    w6_ref, b6_ref,      # 128 -> 784
    enc_ref, dec_ref,
):
    x = x_ref[...]                                                 # [TB, 784]

    # ----- encoder -----
    h1 = jnp.tanh(
        jnp.dot(x, w1_ref[...], preferred_element_type=jnp.float32)
        + b1_ref[...]
    )                                                              # [TB, 128] f32
    h2 = jnp.tanh(
        jnp.dot(h1, w2_ref[...], preferred_element_type=jnp.float32)
        + b2_ref[...]
    )                                                              # [TB, 32]
    # Encoder head: columns 0..2 are the real latent, the rest are 0.
    enc_ref[...] = (
        jnp.dot(h2, w3p_ref[...], preferred_element_type=jnp.float32)
        + b3p_ref[...]
    ).astype(enc_ref.dtype)                                        # [TB, ENC_PAD]

    # ----- decoder (3-wide latent folded into a single 32->32 matmul) -----
    h3 = jnp.tanh(
        jnp.dot(h2, w34_ref[...], preferred_element_type=jnp.float32)
        + b34_ref[...]
    )                                                              # [TB, 32]
    h4 = jnp.tanh(
        jnp.dot(h3, w5_ref[...], preferred_element_type=jnp.float32)
        + b5_ref[...]
    )                                                              # [TB, 128]
    logits = (
        jnp.dot(h4.astype(w6_ref.dtype), w6_ref[...],
                preferred_element_type=jnp.float32) + b6_ref[...]
    )                                                              # [TB, 784]
    dec_ref[...] = jax.nn.sigmoid(logits).astype(dec_ref.dtype)


# ----------------------------------------------------------------------------
# Wrapper: batch-grid pallas_call.
# ----------------------------------------------------------------------------
def vae_forward(x, params, *, batch_tile=512,
                big_matmul_dtype=jnp.float32, out_dtype=jnp.float32):
    """x: [B, 784] float32.  params: list of 6 (W [in,out], b [1,out]) pairs.

    batch_tile:       rows per grid step (default 512; any multiple of 8 works,
                      16 when bf16 is involved).
    big_matmul_dtype: storage/stream dtype of x and the two large weight
                      matrices (bf16 halves ~70% of the HBM bytes on v6e/v7x;
                      MXU accumulation stays f32).  Note: in bf16 the latent
                      precision drops to ~5e-2; cast only w6 if the latent is
                      consumed at full precision downstream.
    out_dtype:        dtype of the enc/dec outputs (bf16 halves the writeback
                      bytes; default f32 preserves the reference semantics).
    """
    (w1, b1), (w2, b2), (w3, b3), (w4, b4), (w5, b5), (w6, b6) = params
    B, F = x.shape
    assert F == IN_FEATURES

    big_dt = jnp.dtype(big_matmul_dtype)
    out_dt = jnp.dtype(out_dtype)

    # Fold the 3-wide latent out of the decoder MXU chain (f32, tiny).
    w34 = w3 @ w4                      # [32, 32]
    b34 = b3 @ w4 + b4                 # [1, 32]
    # Zero-padded encoder head: ENC_PAD columns, real cols = LATENT.
    w3p = jnp.zeros((w3.shape[0], ENC_PAD), w3.dtype).at[:, :LATENT].set(w3)
    b3p = jnp.zeros((1, ENC_PAD), b3.dtype).at[:, :LATENT].set(b3)

    # Stream x and store the two FLOP-carrying matrices in big_matmul_dtype
    # (cast once in the wrapper, not per-tile inside the kernel).
    x_s = x.astype(big_dt)
    w1c = w1.astype(big_dt)
    w6c = w6.astype(big_dt)

    # ---- batch tiling (no host-side pad: Pallas masks the ragged last block) ----
    row_align = 16 if (big_dt == jnp.bfloat16 or out_dt == jnp.bfloat16) else 8
    b_al = _round_up(B, row_align)
    TB = min(_round_up(batch_tile, row_align), b_al)
    if TB >= 512 and pl.cdiv(b_al, TB) < 2:
        # v7x megacore: keep >= 2 grid steps so both TensorCores get work.
        TB = max(256, _round_up(pl.cdiv(b_al, 2), row_align))
    grid = (pl.cdiv(B, TB),)

    def batched(ncols):
        return pl.BlockSpec((TB, ncols), lambda i: (i, 0))

    def resident(arr):
        # Full-array block, constant index_map -> DMA'd once, stays in VMEM.
        # TODO(synk): pipeline_mode=pl.Buffered(1) would drop the unused second
        # buffer of these constant blocks; kept default for compile safety.
        return pl.BlockSpec(arr.shape, lambda i: (0, 0))

    weights = [w1c, b1, w2, b2, w3p, b3p, w34, b34, w5, b5, w6c, b6]
    in_specs = [batched(F)] + [resident(a) for a in weights]

    # Explicit VMEM budget: double-buffered activation tiles + resident weights
    # + f32 compute headroom.  Floor at 32 MiB (covers v5e's 16 MiB default),
    # cap at 64 MiB (v7x physical per-TC VMEM).
    act_bytes = TB * F * (big_dt.itemsize + out_dt.itemsize) + TB * ENC_PAD * out_dt.itemsize
    w_bytes = sum(a.size * a.dtype.itemsize for a in weights)
    vmem_limit = int(min(max(2 * act_bytes + 2 * w_bytes + 4 * TB * F * 4 + (4 << 20),
                             32 << 20),
                         64 << 20))

    enc_pad, dec = pl.pallas_call(
        _vae_kernel,
        out_shape=(
            jax.ShapeDtypeStruct((B, ENC_PAD), out_dt),
            jax.ShapeDtypeStruct((B, F), out_dt),
        ),
        grid=grid,
        in_specs=in_specs,
        out_specs=(batched(ENC_PAD), batched(F)),
        compiler_params=pltpu.CompilerParams(
            dimension_semantics=("parallel",),
            vmem_limit_bytes=vmem_limit,
        ),
    )(x_s, *weights)

    return enc_pad[:, :LATENT], dec


# ----------------------------------------------------------------------------
# Deterministic parameter init (PyTorch nn.Linear-style uniform bounds),
# stored as [in, out] for the kernel's x @ W convention.
# ----------------------------------------------------------------------------
def init_params(key):
    layer_dims = [
        (IN_FEATURES, 128),  # encode[0]
        (128, 32),           # encode[2]
        (32, LATENT),        # encode[4]
        (LATENT, 32),        # decode[0]
        (32, 128),           # decode[2]
        (128, IN_FEATURES),  # decode[4]
    ]
    params = []
    for (fan_in, fan_out) in layer_dims:
        key, kw, kb = jax.random.split(key, 3)
        bound = 1.0 / math.sqrt(fan_in)
        w = jax.random.uniform(
            kw, (fan_in, fan_out), dtype=jnp.float32, minval=-bound, maxval=bound
        )
        b = jax.random.uniform(
            kb, (1, fan_out), dtype=jnp.float32, minval=-bound, maxval=bound
        )
        params.append((w, b))
    return params


def vae_forward_ref(x, params):
    """Plain-JAX reference of the same forward pass."""
    (w1, b1), (w2, b2), (w3, b3), (w4, b4), (w5, b5), (w6, b6) = params
    h = jnp.tanh(x @ w1 + b1)
    h = jnp.tanh(h @ w2 + b2)
    enc = h @ w3 + b3
    h = jnp.tanh(enc @ w4 + b4)
    h = jnp.tanh(h @ w5 + b5)
    dec = jax.nn.sigmoid(h @ w6 + b6)
    return enc, dec


if __name__ == "__main__":
    key = jax.random.PRNGKey(0)
    key, kx = jax.random.split(key)

    B = 8
    x = jax.random.uniform(kx, (B, IN_FEATURES), dtype=jnp.float32)
    params = init_params(key)

    # f32 path, single (small) tile.
    enc, dec = jax.jit(vae_forward)(x, params)
    jax.block_until_ready((enc, dec))

    enc_ref, dec_ref = vae_forward_ref(x, params)
    assert enc.shape == (B, LATENT) and dec.shape == (B, IN_FEATURES)
    assert jnp.allclose(enc, enc_ref, atol=2e-5, rtol=2e-5)
    assert jnp.allclose(dec, dec_ref, atol=2e-5, rtol=2e-5)

    # Multi-tile batch grid with a ragged last tile (no host-side padding).
    key, kx2 = jax.random.split(key)
    B2 = 40
    x2 = jax.random.uniform(kx2, (B2, IN_FEATURES), dtype=jnp.float32)
    enc2, dec2 = jax.jit(lambda a, p: vae_forward(a, p, batch_tile=16))(x2, params)
    jax.block_until_ready((enc2, dec2))
    enc2_ref, dec2_ref = vae_forward_ref(x2, params)
    assert enc2.shape == (B2, LATENT) and dec2.shape == (B2, IN_FEATURES)
    assert jnp.allclose(enc2, enc2_ref, atol=2e-5, rtol=2e-5)
    assert jnp.allclose(dec2, dec2_ref, atol=2e-5, rtol=2e-5)

    # bf16 fast path (v6e/v7x): bf16 x / w1 / w6 streams + bf16 outputs,
    # f32 MXU accumulation, looser tolerance.
    key, kx3 = jax.random.split(key)
    B3 = 32
    x3 = jax.random.uniform(kx3, (B3, IN_FEATURES), dtype=jnp.float32)
    enc_bf, dec_bf = jax.jit(
        lambda a, p: vae_forward(a, p, big_matmul_dtype=jnp.bfloat16,
                                 out_dtype=jnp.bfloat16)
    )(x3, params)
    jax.block_until_ready((enc_bf, dec_bf))
    enc3_ref, dec3_ref = vae_forward_ref(x3, params)
    assert jnp.allclose(enc_bf.astype(jnp.float32), enc3_ref, atol=5e-2)
    assert jnp.allclose(dec_bf.astype(jnp.float32), dec3_ref, atol=5e-2)

    print("KERNEL_OK")
</pallas_src>

<mosaic_0001>
module attributes {stable_mosaic.version = 11 : i64} {
  func.func @_vae_kernel(%arg0: i32, %arg1: memref<8x784xf32, #tpu.memory_space<vmem>>, %arg2: memref<784x128xf32, #tpu.memory_space<vmem>>, %arg3: memref<1x128xf32, #tpu.memory_space<vmem>>, %arg4: memref<128x32xf32, #tpu.memory_space<vmem>>, %arg5: memref<1x32xf32, #tpu.memory_space<vmem>>, %arg6: memref<32x8xf32, #tpu.memory_space<vmem>>, %arg7: memref<1x8xf32, #tpu.memory_space<vmem>>, %arg8: memref<32x32xf32, #tpu.memory_space<vmem>>, %arg9: memref<1x32xf32, #tpu.memory_space<vmem>>, %arg10: memref<32x128xf32, #tpu.memory_space<vmem>>, %arg11: memref<1x128xf32, #tpu.memory_space<vmem>>, %arg12: memref<128x784xf32, #tpu.memory_space<vmem>>, %arg13: memref<1x784xf32, #tpu.memory_space<vmem>>, %arg14: memref<8x8xf32, #tpu.memory_space<vmem>>, %arg15: memref<8x784xf32, #tpu.memory_space<vmem>>) attributes {dimension_semantics = [#tpu.dimension_semantics<parallel>], iteration_bounds = array<i64: 1>, scalar_prefetch = 0 : i64, scratch_operands = 0 : i64, tpu.core_type = #tpu.core_type<tc>, window_params = [{transform_indices = @transform_0, window_bounds = array<i64: 8, 784>}, {pipeline_mode = #tpu.pipeline_mode<synchronous>, transform_indices = @transform_1, window_bounds = array<i64: 784, 128>}, {pipeline_mode = #tpu.pipeline_mode<synchronous>, transform_indices = @transform_2, window_bounds = array<i64: 1, 128>}, {pipeline_mode = #tpu.pipeline_mode<synchronous>, transform_indices = @transform_3, window_bounds = array<i64: 128, 32>}, {pipeline_mode = #tpu.pipeline_mode<synchronous>, transform_indices = @transform_4, window_bounds = array<i64: 1, 32>}, {pipeline_mode = #tpu.pipeline_mode<synchronous>, transform_indices = @transform_5, window_bounds = array<i64: 32, 8>}, {pipeline_mode = #tpu.pipeline_mode<synchronous>, transform_indices = @transform_6, window_bounds = array<i64: 1, 8>}, {pipeline_mode = #tpu.pipeline_mode<synchronous>, transform_indices = @transform_7, window_bounds = array<i64: 32, 32>}, {pipeline_mode = #tpu.pipeline_mode<synchronous>, transform_indices = @transform_8, window_bounds = array<i64: 1, 32>}, {pipeline_mode = #tpu.pipeline_mode<synchronous>, transform_indices = @transform_9, window_bounds = array<i64: 32, 128>}, {pipeline_mode = #tpu.pipeline_mode<synchronous>, transform_indices = @transform_10, window_bounds = array<i64: 1, 128>}, {pipeline_mode = #tpu.pipeline_mode<synchronous>, transform_indices = @transform_11, window_bounds = array<i64: 128, 784>}, {pipeline_mode = #tpu.pipeline_mode<synchronous>, transform_indices = @transform_12, window_bounds = array<i64: 1, 784>}, {transform_indices = @transform_13, window_bounds = array<i64: 8, 8>}, {transform_indices = @transform_14, window_bounds = array<i64: 8, 784>}]} {
    %c0 = arith.constant 0 : index
    %c0_0 = arith.constant 0 : index
    %0 = vector.load %arg1[%c0, %c0_0] : memref<8x784xf32, #tpu.memory_space<vmem>>, vector<8x784xf32>
    %c0_1 = arith.constant 0 : index
    %c0_2 = arith.constant 0 : index
    %1 = vector.load %arg2[%c0_1, %c0_2] : memref<784x128xf32, #tpu.memory_space<vmem>>, vector<784x128xf32>
    %cst = arith.constant dense<0.000000e+00> : vector<8x128xf32>
    %2 = tpu.matmul %0, %1, %cst {dimension_numbers = #tpu.dot_dimension_numbers<[1], [0], [0], [1], [0, 0, 1, 1], [], []>} : vector<8x784xf32>, vector<784x128xf32>, vector<8x128xf32> -> vector<8x128xf32>
    %c0_3 = arith.constant 0 : index
    %c0_4 = arith.constant 0 : index
    %3 = vector.load %arg3[%c0_3, %c0_4] : memref<1x128xf32, #tpu.memory_space<vmem>>, vector<1x128xf32>
    %4 = vector.broadcast %3 : vector<1x128xf32> to vector<8x128xf32>
    %5 = arith.addf %2, %4 : vector<8x128xf32>
    %6 = math.tanh %5 : vector<8x128xf32>
    %c0_5 = arith.constant 0 : index
    %c0_6 = arith.constant 0 : index
    %7 = vector.load %arg4[%c0_5, %c0_6] : memref<128x32xf32, #tpu.memory_space<vmem>>, vector<128x32xf32>
    %cst_7 = arith.constant dense<0.000000e+00> : vector<8x32xf32>
    %8 = tpu.matmul %6, %7, %cst_7 {dimension_numbers = #tpu.dot_dimension_numbers<[1], [0], [0], [1], [0, 0, 1, 1], [], []>} : vector<8x128xf32>, vector<128x32xf32>, vector<8x32xf32> -> vector<8x32xf32>
    %c0_8 = arith.constant 0 : index
    %c0_9 = arith.constant 0 : index
    %9 = vector.load %arg5[%c0_8, %c0_9] : memref<1x32xf32, #tpu.memory_space<vmem>>, vector<1x32xf32>
    %10 = vector.broadcast %9 : vector<1x32xf32> to vector<8x32xf32>
    %11 = arith.addf %8, %10 : vector<8x32xf32>
    %12 = math.tanh %11 : vector<8x32xf32>
    %c0_10 = arith.constant 0 : index
    %c0_11 = arith.constant 0 : index
    %13 = vector.load %arg6[%c0_10, %c0_11] : memref<32x8xf32, #tpu.memory_space<vmem>>, vector<32x8xf32>
    %cst_12 = arith.constant dense<0.000000e+00> : vector<8x8xf32>
    %14 = tpu.matmul %12, %13, %cst_12 {dimension_numbers = #tpu.dot_dimension_numbers<[1], [0], [0], [1], [0, 0, 1, 1], [], []>} : vector<8x32xf32>, vector<32x8xf32>, vector<8x8xf32> -> vector<8x8xf32>
    %c0_13 = arith.constant 0 : index
    %c0_14 = arith.constant 0 : index
    %15 = vector.load %arg7[%c0_13, %c0_14] : memref<1x8xf32, #tpu.memory_space<vmem>>, vector<1x8xf32>
    %16 = vector.broadcast %15 : vector<1x8xf32> to vector<8x8xf32>
    %17 = arith.addf %14, %16 : vector<8x8xf32>
    %c0_15 = arith.constant 0 : index
    %c0_16 = arith.constant 0 : index
    %18 = vector.load %arg14[%c0_15, %c0_16] : memref<8x8xf32, #tpu.memory_space<vmem>>, vector<8x8xf32>
    tpu.vector_store %arg14[%c0_15, %c0_16], %17 {strides = array<i32>} : memref<8x8xf32, #tpu.memory_space<vmem>>, vector<8x8xf32>,
    %c0_17 = arith.constant 0 : index
    %c0_18 = arith.constant 0 : index
    %19 = vector.load %arg8[%c0_17, %c0_18] : memref<32x32xf32, #tpu.memory_space<vmem>>, vector<32x32xf32>
    %cst_19 = arith.constant dense<0.000000e+00> : vector<8x32xf32>
    %20 = tpu.matmul %12, %19, %cst_19 {dimension_numbers = #tpu.dot_dimension_numbers<[1], [0], [0], [1], [0, 0, 1, 1], [], []>} : vector<8x32xf32>, vector<32x32xf32>, vector<8x32xf32> -> vector<8x32xf32>
    %c0_20 = arith.constant 0 : index
    %c0_21 = arith.constant 0 : index
    %21 = vector.load %arg9[%c0_20, %c0_21] : memref<1x32xf32, #tpu.memory_space<vmem>>, vector<1x32xf32>
    %22 = vector.broadcast %21 : vector<1x32xf32> to vector<8x32xf32>
    %23 = arith.addf %20, %22 : vector<8x32xf32>
    %24 = math.tanh %23 : vector<8x32xf32>
    %c0_22 = arith.constant 0 : index
    %c0_23 = arith.constant 0 : index
    %25 = vector.load %arg10[%c0_22, %c0_23] : memref<32x128xf32, #tpu.memory_space<vmem>>, vector<32x128xf32>
    %cst_24 = arith.constant dense<0.000000e+00> : vector<8x128xf32>
    %26 = tpu.matmul %24, %25, %cst_24 {dimension_numbers = #tpu.dot_dimension_numbers<[1], [0], [0], [1], [0, 0, 1, 1], [], []>} : vector<8x32xf32>, vector<32x128xf32>, vector<8x128xf32> -> vector<8x128xf32>
    %c0_25 = arith.constant 0 : index
    %c0_26 = arith.constant 0 : index
    %27 = vector.load %arg11[%c0_25, %c0_26] : memref<1x128xf32, #tpu.memory_space<vmem>>, vector<1x128xf32>
    %28 = vector.broadcast %27 : vector<1x128xf32> to vector<8x128xf32>
    %29 = arith.addf %26, %28 : vector<8x128xf32>
    %30 = math.tanh %29 : vector<8x128xf32>
    %c0_27 = arith.constant 0 : index
    %c0_28 = arith.constant 0 : index
    %31 = vector.load %arg12[%c0_27, %c0_28] : memref<128x784xf32, #tpu.memory_space<vmem>>, vector<128x784xf32>
    %cst_29 = arith.constant dense<0.000000e+00> : vector<8x784xf32>
    %32 = tpu.matmul %30, %31, %cst_29 {dimension_numbers = #tpu.dot_dimension_numbers<[1], [0], [0], [1], [0, 0, 1, 1], [], []>} : vector<8x128xf32>, vector<128x784xf32>, vector<8x784xf32> -> vector<8x784xf32>
    %c0_30 = arith.constant 0 : index
    %c0_31 = arith.constant 0 : index
    %33 = vector.load %arg13[%c0_30, %c0_31] : memref<1x784xf32, #tpu.memory_space<vmem>>, vector<1x784xf32>
    %34 = vector.broadcast %33 : vector<1x784xf32> to vector<8x784xf32>
    %35 = arith.addf %32, %34 : vector<8x784xf32>
    %36 = arith.negf %35 : vector<8x784xf32>
    %37 = math.exp %36 : vector<8x784xf32>
    %cst_32 = arith.constant 1.000000e+00 : f32
    %38 = vector.broadcast %cst_32 : f32 to vector<8x784xf32>
    %39 = arith.addf %38, %37 : vector<8x784xf32>
    %40 = arith.divf %38, %39 : vector<8x784xf32>
    %c0_33 = arith.constant 0 : index
    %c0_34 = arith.constant 0 : index
    %41 = vector.load %arg15[%c0_33, %c0_34] : memref<8x784xf32, #tpu.memory_space<vmem>>, vector<8x784xf32>
    tpu.vector_store %arg15[%c0_33, %c0_34], %40 {strides = array<i32>} : memref<8x784xf32, #tpu.memory_space<vmem>>, vector<8x784xf32>,
    return
  }
  func.func @transform_0(%arg0: i32) -> (i32, i32) {
    %c0_i32 = arith.constant 0 : i32
    %c0_i32_0 = arith.constant 0 : i32
    return %arg0, %c0_i32 : i32, i32
  }
  func.func @transform_1(%arg0: i32) -> (i32, i32) {
    %c0_i32 = arith.constant 0 : i32
    %c0_i32_0 = arith.constant 0 : i32
    %c0_i32_1 = arith.constant 0 : i32
    return %c0_i32, %c0_i32_0 : i32, i32
  }
  func.func @transform_2(%arg0: i32) -> (i32, i32) {
    %c0_i32 = arith.constant 0 : i32
    %c0_i32_0 = arith.constant 0 : i32
    %c0_i32_1 = arith.constant 0 : i32
    return %c0_i32, %c0_i32_0 : i32, i32
  }
  func.func @transform_3(%arg0: i32) -> (i32, i32) {
    %c0_i32 = arith.constant 0 : i32
    %c0_i32_0 = arith.constant 0 : i32
    %c0_i32_1 = arith.constant 0 : i32
    return %c0_i32, %c0_i32_0 : i32, i32
  }
  func.func @transform_4(%arg0: i32) -> (i32, i32) {
    %c0_i32 = arith.constant 0 : i32
    %c0_i32_0 = arith.constant 0 : i32
    %c0_i32_1 = arith.constant 0 : i32
    return %c0_i32, %c0_i32_0 : i32, i32
  }
  func.func @transform_5(%arg0: i32) -> (i32, i32) {
    %c0_i32 = arith.constant 0 : i32
    %c0_i32_0 = arith.constant 0 : i32
    %c0_i32_1 = arith.constant 0 : i32
    return %c0_i32, %c0_i32_0 : i32, i32
  }
  func.func @transform_6(%arg0: i32) -> (i32, i32) {
    %c0_i32 = arith.constant 0 : i32
    %c0_i32_0 = arith.constant 0 : i32
    %c0_i32_1 = arith.constant 0 : i32
    return %c0_i32, %c0_i32_0 : i32, i32
  }
  func.func @transform_7(%arg0: i32) -> (i32, i32) {
    %c0_i32 = arith.constant 0 : i32
    %c0_i32_0 = arith.constant 0 : i32
    %c0_i32_1 = arith.constant 0 : i32
    return %c0_i32, %c0_i32_0 : i32, i32
  }
  func.func @transform_8(%arg0: i32) -> (i32, i32) {
    %c0_i32 = arith.constant 0 : i32
    %c0_i32_0 = arith.constant 0 : i32
    %c0_i32_1 = arith.constant 0 : i32
    return %c0_i32, %c0_i32_0 : i32, i32
  }
  func.func @transform_9(%arg0: i32) -> (i32, i32) {
    %c0_i32 = arith.constant 0 : i32
    %c0_i32_0 = arith.constant 0 : i32
    %c0_i32_1 = arith.constant 0 : i32
    return %c0_i32, %c0_i32_0 : i32, i32
  }
  func.func @transform_10(%arg0: i32) -> (i32, i32) {
    %c0_i32 = arith.constant 0 : i32
    %c0_i32_0 = arith.constant 0 : i32
    %c0_i32_1 = arith.constant 0 : i32
    return %c0_i32, %c0_i32_0 : i32, i32
  }
  func.func @transform_11(%arg0: i32) -> (i32, i32) {
    %c0_i32 = arith.constant 0 : i32
    %c0_i32_0 = arith.constant 0 : i32
    %c0_i32_1 = arith.constant 0 : i32
    return %c0_i32, %c0_i32_0 : i32, i32
  }
  func.func @transform_12(%arg0: i32) -> (i32, i32) {
    %c0_i32 = arith.constant 0 : i32
    %c0_i32_0 = arith.constant 0 : i32
    %c0_i32_1 = arith.constant 0 : i32
    return %c0_i32, %c0_i32_0 : i32, i32
  }
  func.func @transform_13(%arg0: i32) -> (i32, i32) {
    %c0_i32 = arith.constant 0 : i32
    %c0_i32_0 = arith.constant 0 : i32
    return %arg0, %c0_i32 : i32, i32
  }
  func.func @transform_14(%arg0: i32) -> (i32, i32) {
    %c0_i32 = arith.constant 0 : i32
    %c0_i32_0 = arith.constant 0 : i32
    return %arg0, %c0_i32 : i32, i32
  }
}

</mosaic_0001>

<bundles_post_ra>
// kernel: vae_forward.1
= control target key start
LH: loop header
LB: loop body
LE: loop exit
PB: predicated region body
PF: predicated region fallthrough
CT: control target
= control target key end

     0   :  { %s1827_s0 = inlined_call_operand.vmem [shape: f32[8,784], index: 0, kind: input, shape index: {}]   ;;  %s1828_s1 = inlined_call_operand.vmem [shape: f32[784,128], index: 1, kind: input, shape index: {}]   ;;  %s1829_s2 = inlined_call_operand.vmem [shape: f32[1,128], index: 2, kind: input, shape index: {}]   ;;  %s1830_s3 = inlined_call_operand.vmem [shape: f32[128,32], index: 3, kind: input, shape index: {}]   ;;  %s1831_s4 = inlined_call_operand.vmem [shape: f32[1,32], index: 4, kind: input, shape index: {}]   ;;  %s1832_s5 = inlined_call_operand.vmem [shape: f32[32,8], index: 5, kind: input, shape index: {}]   ;;  %s1833_s6 = inlined_call_operand.vmem [shape: f32[1,8], index: 6, kind: input, shape index: {}]   ;;  %s1834_s7 = inlined_call_operand.vmem [shape: f32[32,32], index: 7, kind: input, shape index: {}]   ;;  %s1835_s8 = inlined_call_operand.vmem [shape: f32[1,32], index: 8, kind: input, shape index: {}]   ;;  %s1836_s9 = inlined_call_operand.vmem [shape: f32[32,128], index: 9, kind: input, shape index: {}]   ;;  %s1837_s10 = inlined_call_operand.vmem [shape: f32[1,128], index: 10, kind: input, shape index: {}]   ;;  %s1838_s11 = inlined_call_operand.vmem [shape: f32[128,784], index: 11, kind: input, shape index: {}]   ;;  %s1839_s12 = inlined_call_operand.vmem [shape: f32[1,784], index: 12, kind: input, shape index: {}]   ;;  %s1840_s13 = inlined_call_operand.vmem [shape: f32[8,8], index: 13, kind: output, shape index: {0}]   ;;  %s1841_s14 = inlined_call_operand.hbm [shape: f32[8,784], index: 14, kind: output, shape index: {1}]  }
   0x1   :  { %v69_v0 = vld [vmem:[%s1828_s1 + $0x78] sm:$0xff]  ;;  %v68_v1 = vld [vmem:[%s1828_s1 + $0x70] sm:$0xff]  ;;  %v67_v4 = vld [vmem:[%s1828_s1 + $0x68] sm:$0xff] }
   0x2   :  { %v85_v2 = vld [vmem:[%s1828_s1 + $0xf8] sm:$0xff]  ;;  %160 = vmatpush.msra.mxu0 %v69_v0  ;;  %v84_v3 = vld [vmem:[%s1828_s1 + $0xf0] sm:$0xff]  ;;  %v83_v5 = vld [vmem:[%s1828_s1 + $0xe8] sm:$0xff] }
   0x3   :  { %180 = vmatpush.msra.mxu1 %v85_v2  ;;  %v66_v6 = vld [vmem:[%s1828_s1 + $0x60] sm:$0xff]  ;;  %v65_v8 = vld [vmem:[%s1828_s1 + $0x58] sm:$0xff]  ;;  %v64_v10 = vld [vmem:[%s1828_s1 + $0x50] sm:$0xff] }
   0x4   :  { %161 = vmatpush.msra.mxu0 %v68_v1  ;;  %v82_v7 = vld [vmem:[%s1828_s1 + $0xe0] sm:$0xff]  ;;  %v81_v9 = vld [vmem:[%s1828_s1 + $0xd8] sm:$0xff]  ;;  %v80_v12 = vld [vmem:[%s1828_s1 + $0xd0] sm:$0xff] }
   0x5   :  { %181 = vmatpush.msra.mxu1 %v84_v3  ;;  %v101_v11 = vld [vmem:[%s1828_s1 + $0x178] sm:$0xff]  ;;  %v100_v13 = vld [vmem:[%s1828_s1 + $0x170] sm:$0xff]  ;;  %v99_v15 = vld [vmem:[%s1828_s1 + $0x168] sm:$0xff] }
   0x6   :  { %162 = vmatpush.msra.mxu0 %v67_v4  ;;  %200 = vmatpush.msra.mxu2 %v101_v11  ;;  %v117_v14 = vld [vmem:[%s1828_s1 + $0x1f8] sm:$0xff]  ;;  %v116_v16 = vld [vmem:[%s1828_s1 + $0x1f0] sm:$0xff]  ;;  %v63_v17 = vld [vmem:[%s1828_s1 + $0x48] sm:$0xff] }
   0x7   :  { %182 = vmatpush.msra.mxu1 %v83_v5  ;;  %v79_v18 = vld [vmem:[%s1828_s1 + $0xc8] sm:$0xff]  ;;  %220 = vmatpush.msra.mxu3 %v117_v14  ;;  %v98_v19 = vld [vmem:[%s1828_s1 + $0x160] sm:$0xff]  ;;  %v97_v23 = vld [vmem:[%s1828_s1 + $0x158] sm:$0xff] }
   0x8   :  { %163 = vmatpush.msra.mxu0 %v66_v6  ;;  %201 = vmatpush.msra.mxu2 %v100_v13  ;;  %v115_v20 = vld [vmem:[%s1828_s1 + $0x1e8] sm:$0xff]  ;;  %v62_v21 = vld [vmem:[%s1828_s1 + $0x40] sm:$0xff]  ;;  %v61_v25 = vld [vmem:[%s1828_s1 + $0x38] sm:$0xff] }
   0x9   :  { %183 = vmatpush.msra.mxu1 %v82_v7  ;;  %v78_v22 = vld [vmem:[%s1828_s1 + $0xc0] sm:$0xff]  ;;  %221 = vmatpush.msra.mxu3 %v116_v16  ;;  %v77_v26 = vld [vmem:[%s1828_s1 + $0xb8] sm:$0xff]  ;;  %v96_v27 = vld [vmem:[%s1828_s1 + $0x150] sm:$0xff] }
   0xa   :  { %164 = vmatpush.msra.mxu0 %v65_v8  ;;  %202 = vmatpush.msra.mxu2 %v99_v15  ;;  %v114_v24 = vld [vmem:[%s1828_s1 + $0x1e0] sm:$0xff]  ;;  %v113_v28 = vld [vmem:[%s1828_s1 + $0x1d8] sm:$0xff]  ;;  %v60_v29 = vld [vmem:[%s1828_s1 + $0x30] sm:$0xff] }
   0xb   :  { %184 = vmatpush.msra.mxu1 %v81_v9  ;;  %222 = vmatpush.msra.mxu3 %v115_v20  ;;  %v76_v30 = vld [vmem:[%s1828_s1 + $0xb0] sm:$0xff]  ;;  %v95_v31 = vld [vmem:[%s1828_s1 + $0x148] sm:$0xff]  ;;  %v94_v35 = vld [vmem:[%s1828_s1 + $0x140] sm:$0xff] }
   0xc   :  { %165 = vmatpush.msra.mxu0 %v64_v10  ;;  %203 = vmatpush.msra.mxu2 %v98_v19  ;;  %v112_v32 = vld [vmem:[%s1828_s1 + $0x1d0] sm:$0xff]  ;;  %v59_v33 = vld [vmem:[%s1828_s1 + $0x28] sm:$0xff]  ;;  %v58_v37 = vld [vmem:[%s1828_s1 + $0x20] sm:$0xff] }
   0xd   :  { %185 = vmatpush.msra.mxu1 %v80_v12  ;;  %223 = vmatpush.msra.mxu3 %v114_v24  ;;  %v75_v34 = vld [vmem:[%s1828_s1 + $0xa8] sm:$0xff]  ;;  %v74_v38 = vld [vmem:[%s1828_s1 + $0xa0] sm:$0xff]  ;;  %v93_v39 = vld [vmem:[%s1828_s1 + $0x138] sm:$0xff] }
   0xe   :  { %166 = vmatpush.msra.mxu0 %v63_v17  ;;  %204 = vmatpush.msra.mxu2 %v97_v23  ;;  %v111_v36 = vld [vmem:[%s1828_s1 + $0x1c8] sm:$0xff]  ;;  %v110_v40 = vld [vmem:[%s1828_s1 + $0x1c0] sm:$0xff]  ;;  %v57_v41 = vld [vmem:[%s1828_s1 + $0x18] sm:$0xff] }
   0xf   :  { %186 = vmatpush.msra.mxu1 %v79_v18  ;;  %224 = vmatpush.msra.mxu3 %v113_v28  ;;  %v73_v42 = vld [vmem:[%s1828_s1 + $0x98] sm:$0xff]  ;;  %v92_v43 = vld [vmem:[%s1828_s1 + $0x130] sm:$0xff]  ;;  %v91_v47 = vld [vmem:[%s1828_s1 + $0x128] sm:$0xff] }
  0x10   :  { %167 = vmatpush.msra.mxu0 %v62_v21  ;;  %205 = vmatpush.msra.mxu2 %v96_v27  ;;  %v109_v44 = vld [vmem:[%s1828_s1 + $0x1b8] sm:$0xff]  ;;  %v56_v45 = vld [vmem:[%s1828_s1 + $0x10] sm:$0xff]  ;;  %v55_v49 = vld [vmem:[%s1828_s1 + $0x8] sm:$0xff] }
  0x11   :  { %187 = vmatpush.msra.mxu1 %v78_v22  ;;  %225 = vmatpush.msra.mxu3 %v112_v32  ;;  %v72_v46 = vld [vmem:[%s1828_s1 + $0x90] sm:$0xff]  ;;  %v71_v50 = vld [vmem:[%s1828_s1 + $0x88] sm:$0xff]  ;;  %v90_v51 = vld [vmem:[%s1828_s1 + $0x120] sm:$0xff] }
  0x12   :  { %168 = vmatpush.msra.mxu0 %v61_v25  ;;  %206 = vmatpush.msra.mxu2 %v95_v31  ;;  %v108_v48 = vld [vmem:[%s1828_s1 + $0x1b0] sm:$0xff]  ;;  %v107_v52 = vld [vmem:[%s1828_s1 + $0x1a8] sm:$0xff]  ;;  %v54_v53 = vld [vmem:[%s1828_s1] sm:$0xff] }
  0x13   :  { %188 = vmatpush.msra.mxu1 %v77_v26  ;;  %226 = vmatpush.msra.mxu3 %v111_v36  ;;  %v70_v54 = vld [vmem:[%s1828_s1 + $0x80] sm:$0xff]  ;;  %v133_v55 = vld [vmem:[%s1828_s1 + $0x278] sm:$0xff]  ;;  %v132_v59 = vld [vmem:[%s1828_s1 + $0x270] sm:$0xff] }
  0x14   :  { %169 = vmatpush.msra.mxu0 %v60_v29  ;;  %207 = vmatpush.msra.mxu2 %v94_v35  ;;  %v149_v56 = vld [vmem:[%s1828_s1 + $0x2f8] sm:$0xff]  ;;  %v106_v58 = vld [vmem:[%s1828_s1 + $0x1a0] sm:$0xff]  ;;  %v148_v60 = vld [vmem:[%s1828_s1 + $0x2f0] sm:$0xff] }
  0x15   :  { %189 = vmatpush.msra.mxu1 %v76_v30  ;;  %227 = vmatpush.msra.mxu3 %v110_v40  ;;  %v89_v57 = vld [vmem:[%s1828_s1 + $0x118] sm:$0xff]  ;;  %v88_v61 = vld [vmem:[%s1828_s1 + $0x110] sm:$0xff]  ;;  %v131_v63 = vld [vmem:[%s1828_s1 + $0x268] sm:$0xff] }
  0x16   :  { %170 = vmatpush.msra.mxu0 %v59_v33  ;;  %208 = vmatpush.msra.mxu2 %v93_v39  ;;  %v105_v62 = vld [vmem:[%s1828_s1 + $0x198] sm:$0xff]  ;;  %v147_v0 = vld [vmem:[%s1828_s1 + $0x2e8] sm:$0xff]  ;;  %v130_v1 = vld [vmem:[%s1828_s1 + $0x260] sm:$0xff] }
  0x17   :  { %190 = vmatpush.msra.mxu1 %v75_v34  ;;  %228 = vmatpush.msra.mxu3 %v109_v44  ;;  %v87_v2 = vld [vmem:[%s1828_s1 + $0x108] sm:$0xff]  ;;  %v104_v3 = vld [vmem:[%s1828_s1 + $0x190] sm:$0xff]  ;;  %v129_v4 = vld [vmem:[%s1828_s1 + $0x258] sm:$0xff] }
  0x18   :  { %171 = vmatpush.msra.mxu0 %v58_v37  ;;  %209 = vmatpush.msra.mxu2 %v92_v43  ;;  %v146_v5 = vld [vmem:[%s1828_s1 + $0x2e0] sm:$0xff]  ;;  %v145_v6 = vld [vmem:[%s1828_s1 + $0x2d8] sm:$0xff]  ;;  %v103_v8 = vld [vmem:[%s1828_s1 + $0x188] sm:$0xff] }
  0x19   :  { %191 = vmatpush.msra.mxu1 %v74_v38  ;;  %229 = vmatpush.msra.mxu3 %v108_v48  ;;  %v86_v7 = vld [vmem:[%s1828_s1 + $0x100] sm:$0xff]  ;;  %v49_v9 = vld [vmem:[%s1827_s0 + $0x10] sm:$0xff] }
  0x1a   :  { %172 = vmatpush.msra.mxu0 %v57_v41  ;;  %210 = vmatpush.msra.mxu2 %v91_v47  ;;  %v102_v10 = vld [vmem:[%s1828_s1 + $0x180] sm:$0xff] }
  0x1b   :  { %192 = vmatpush.msra.mxu1 %v73_v42  ;;  %230 = vmatpush.msra.mxu3 %v107_v52 }
  0x1c   :  { %173 = vmatpush.msra.mxu0 %v56_v45  ;;  %211 = vmatpush.msra.mxu2 %v90_v51 }
  0x1d   :  { %193 = vmatpush.msra.mxu1 %v72_v46  ;;  %231 = vmatpush.msra.mxu3 %v106_v58 }
  0x1e   :  { %174 = vmatpush.msra.mxu0 %v55_v49  ;;  %212 = vmatpush.msra.mxu2 %v89_v57 }
  0x1f   :  { %194 = vmatpush.msra.mxu1 %v71_v50  ;;  %232 = vmatpush.msra.mxu3 %v105_v62 }
  0x20   :  { %175 = vmatpush.msra.mxu0 %v54_v53  ;;  %213 = vmatpush.msra.mxu2 %v88_v61 }
  0x21   :  { %195 = vmatpush.msra.mxu1 %v70_v54  ;;  %233 = vmatpush.msra.mxu3 %v104_v3 }
  0x22   :  { %240 = vmatpush.msrb.mxu0 %v133_v55  ;;  %214 = vmatpush.msra.mxu2 %v87_v2 }
  0x23   :  { %260 = vmatpush.msrb.mxu1 %v149_v56 }
  0x24   :  { %241 = vmatpush.msrb.mxu0 %v132_v59 }
  0x25   :  { %261 = vmatpush.msrb.mxu1 %v148_v60 }
  0x26   :  { %242 = vmatpush.msrb.mxu0 %v131_v63 }
  0x27   :  { %262 = vmatpush.msrb.mxu1 %v147_v0 }
  0x28   :  { %243 = vmatpush.msrb.mxu0 %v130_v1 }
  0x29   :  { %263 = vmatpush.msrb.mxu1 %v146_v5 }
  0x2a   :  { %20 = vsyncpa [#allocation3], 0  ;;  %v128_v11 = vld [vmem:[%s1828_s1 + $0x250] sm:$0xff]  ;;  %215 = vmatpush.msra.mxu2 %v86_v7  ;;  %234 = vmatpush.msra.mxu3 %v103_v8  ;;  %v151_v13 = vld [vmem:[%s1828_s1 + $0x308] sm:$0xff]  ;;  %vm156_vm0 = vcmask 130048   ;;  %vm350_vm1 = vcmask 261120  }
  0x2b   :  { %v144_v12 = vld [vmem:[%s1828_s1 + $0x2d0] sm:$0xff]  ;;  %244 = vmatpush.msrb.mxu0 %v129_v4  ;;  %264 = vmatpush.msrb.mxu1 %v145_v6  ;;  %v47_v14 = vld [vmem:[%s1827_s0] sm:$0xff]  ;;  %v127_v15 = vld [vmem:[%s1828_s1 + $0x248] sm:$0xff]  ;;  %vm374_vm2 = vcmask 64512   ;;  %s854_s30 = sshll.u32 %s1841_s14, 4  ;;  %s855_s30 = int_to_ptr.hbm [resolvable:$true] %s854_s30 }
  0x2c   :  { %v143_v16 = vld [vmem:[%s1828_s1 + $0x2c8] sm:$0xff]  ;;  %216 = vmatmul.f32.vlgmr.msra.gmra.mxu2 %v49_v9  ;;  %235 = vmatpush.msra.mxu3 %v102_v10  ;;  %v50_v17 = vld [vmem:[%s1827_s0 + $0x18] sm:$0xff]  ;;  %v126_v19 = vld [vmem:[%s1828_s1 + $0x240] sm:$0xff] }
  0x2d   :  { %245 = vmatpush.msrb.mxu0 %v128_v11  ;;  %265 = vmatpush.msrb.mxu1 %v144_v12  ;;  %v48_v18 = vld [vmem:[%s1827_s0 + $0x8] sm:$0xff]  ;;  %v142_v20 = vld [vmem:[%s1828_s1 + $0x2c0] sm:$0xff]  ;;  %v316_v22 = vld [vmem:[%s1830_s3 + $0x78] sm:$0xff] }
  0x2e   :  { %294 = vmatpush.msrb.mxu2 %v151_v13  ;;  %176 = vmatmul.f32.vlgmr.msra.gmra.mxu0 %v47_v14  ;;  %v150_v21 = vld [vmem:[%s1828_s1 + $0x300] sm:$0xff]  ;;  %v125_v23 = vld [vmem:[%s1828_s1 + $0x238] sm:$0xff]  ;;  %v53_v25 = vld [vmem:[%s1827_s0 + $0x30] sm:$0xff] }
  0x2f   :  { %246 = vmatpush.msrb.mxu0 %v127_v15  ;;  %266 = vmatpush.msrb.mxu1 %v143_v16  ;;  %v141_v24 = vld [vmem:[%s1828_s1 + $0x2b8] sm:$0xff]  ;;  %v315_v26 = vld [vmem:[%s1830_s3 + $0x70] sm:$0xff]  ;;  %v314_v29 = vld [vmem:[%s1830_s3 + $0x68] sm:$0xff] }
  0x30   :  { %236 = vmatmul.f32.vlgmr.msra.gmra.mxu3 %v50_v17  ;;  %196 = vmatmul.f32.vlgmr.msra.gmra.mxu1 %v48_v18  ;;  %v124_v27 = vld [vmem:[%s1828_s1 + $0x230] sm:$0xff]  ;;  %v123_v30 = vld [vmem:[%s1828_s1 + $0x228] sm:$0xff]  ;;  %v313_v32 = vld [vmem:[%s1830_s3 + $0x60] sm:$0xff] }
  0x31   :  { %247 = vmatpush.msrb.mxu0 %v126_v19  ;;  %267 = vmatpush.msrb.mxu1 %v142_v20  ;;  %v140_v28 = vld [vmem:[%s1828_s1 + $0x2b0] sm:$0xff]  ;;  %v139_v31 = vld [vmem:[%s1828_s1 + $0x2a8] sm:$0xff]  ;;  %v122_v33 = vld [vmem:[%s1828_s1 + $0x220] sm:$0xff] }
  0x32   :  { %295 = vmatpush.msrb.mxu2 %v150_v21  ;;  %321 = vmatpush.msrb.mxu3 %v316_v22  ;;  %v138_v34 = vld [vmem:[%s1828_s1 + $0x2a0] sm:$0xff]  ;;  %v312_v35 = vld [vmem:[%s1830_s3 + $0x58] sm:$0xff]  ;;  %v120_v38 = vld [vmem:[%s1828_s1 + $0x210] sm:$0xff] }
  0x33   :  { %248 = vmatpush.msrb.mxu0 %v125_v23  ;;  %268 = vmatpush.msrb.mxu1 %v141_v24  ;;  %v121_v36 = vld [vmem:[%s1828_s1 + $0x218] sm:$0xff]  ;;  %v136_v39 = vld [vmem:[%s1828_s1 + $0x290] sm:$0xff]  ;;  %v119_v40 = vld [vmem:[%s1828_s1 + $0x208] sm:$0xff] }
  0x34   :  { %865 = vmatmul.msk.f32.vlgmr.msrb.gmra.mxu2 %vm156_vm0, %v53_v25  ;;  %322 = vmatpush.msrb.mxu3 %v315_v26  ;;  %v137_v37 = vld [vmem:[%s1828_s1 + $0x298] sm:$0xff]  ;;  %v135_v41 = vld [vmem:[%s1828_s1 + $0x288] sm:$0xff]  ;;  %v118_v42 = vld [vmem:[%s1828_s1 + $0x200] sm:$0xff] }
  0x35   :  { %249 = vmatpush.msrb.mxu0 %v124_v27  ;;  %269 = vmatpush.msrb.mxu1 %v140_v28  ;;  %v134_v43 = vld [vmem:[%s1828_s1 + $0x280] sm:$0xff]  ;;  %v52_v45 = vld [vmem:[%s1827_s0 + $0x28] sm:$0xff]  ;;  %v311_v46 = vld [vmem:[%s1830_s3 + $0x50] sm:$0xff] }
  0x36   :  { %323 = vmatpush.msrb.mxu3 %v314_v29  ;;  %v51_v44 = vld [vmem:[%s1827_s0 + $0x20] sm:$0xff]  ;;  %v310_v47 = vld [vmem:[%s1830_s3 + $0x48] sm:$0xff]  ;;  %v308_v49 = vld [vmem:[%s1830_s3 + $0x38] sm:$0xff] }
  0x37   :  { %250 = vmatpush.msrb.mxu0 %v123_v30  ;;  %270 = vmatpush.msrb.mxu1 %v139_v31  ;;  %v309_v48 = vld [vmem:[%s1830_s3 + $0x40] sm:$0xff]  ;;  %v307_v50 = vld [vmem:[%s1830_s3 + $0x30] sm:$0xff]  ;;  %v306_v51 = vld [vmem:[%s1830_s3 + $0x28] sm:$0xff] }
  0x38   :  { %324 = vmatpush.msrb.mxu3 %v313_v32  ;;  %v305_v52 = vld [vmem:[%s1830_s3 + $0x20] sm:$0xff]  ;;  %v304_v53 = vld [vmem:[%s1830_s3 + $0x18] sm:$0xff]  ;;  %v303_v54 = vld [vmem:[%s1830_s3 + $0x10] sm:$0xff] }
  0x39   :  { %251 = vmatpush.msrb.mxu0 %v122_v33  ;;  %271 = vmatpush.msrb.mxu1 %v138_v34  ;;  %v302_v55 = vld [vmem:[%s1830_s3 + $0x8] sm:$0xff]  ;;  %v301_v56 = vld [vmem:[%s1830_s3] sm:$0xff]  ;;  %v345_v9 = vld [vmem:[%s1832_s5 + $0x18] sm:$0xff] }
  0x3a   :  { %325 = vmatpush.msrb.mxu3 %v312_v35  ;;  %v877_v57 = vld [vmem:[%s1829_s2] ss:$0 sm:$0xff]  ;;  %366 = vmatpush.msra.mxu2 %v345_v9  ;;  %v344_v10 = vld [vmem:[%s1832_s5 + $0x10] sm:$0xff]  ;;  %v343_v11 = vld [vmem:[%s1832_s5 + $0x8] sm:$0xff] }
  0x3b   :  { %252 = vmatpush.msrb.mxu0 %v121_v36  ;;  %272 = vmatpush.msrb.mxu1 %v137_v37  ;;  %v342_v12 = vld [vmem:[%s1832_s5] sm:$0xff]  ;;  %v379_v13 = vld [vmem:[%s1834_s7 + $0x18] sm:$0xff]  ;;  %v378_v14 = vld [vmem:[%s1834_s7 + $0x10] sm:$0xff] }
  0x3c   :  { %326 = vmatpush.msrb.mxu3 %v311_v46  ;;  %367 = vmatpush.msra.mxu2 %v344_v10  ;;  %v377_v15 = vld [vmem:[%s1834_s7 + $0x8] sm:$0xff]  ;;  %v376_v16 = vld [vmem:[%s1834_s7] sm:$0xff]  ;;  %v408_v21 = vld [vmem:[%s1836_s9 + $0x18] sm:$0xff] }
  0x3d   :  { %253 = vmatpush.msrb.mxu0 %v120_v38  ;;  %273 = vmatpush.msrb.mxu1 %v136_v39  ;;  %v878_v17 = vld [vmem:[%s1831_s4] ss:$0 sm:$0xff]  ;;  %v407_v22 = vld [vmem:[%s1836_s9 + $0x10] sm:$0xff]  ;;  %v406_v23 = vld [vmem:[%s1836_s9 + $0x8] sm:$0xff] }
  0x3e   :  { %327 = vmatpush.msrb.mxu3 %v310_v47  ;;  %368 = vmatpush.msra.mxu2 %v343_v11  ;;  %v405_v24 = vld [vmem:[%s1836_s9] sm:$0xff]  ;;  %v542_v25 = vld [vmem:[%s1838_s11 + $0x348] sm:$0xff]  ;;  %v543_v26 = vld [vmem:[%s1838_s11 + $0x350] sm:$0xff] }
  0x3f   :  { %254 = vmatpush.msrb.mxu0 %v119_v40  ;;  %274 = vmatpush.msrb.mxu1 %v135_v41  ;;  %v544_v27 = vld [vmem:[%s1838_s11 + $0x358] sm:$0xff]  ;;  %v535_v28 = vld [vmem:[%s1838_s11 + $0x310] sm:$0xff]  ;;  %v537_v30 = vld [vmem:[%s1838_s11 + $0x320] sm:$0xff] }
  0x40   :  { %328 = vmatpush.msrb.mxu3 %v309_v48  ;;  %369 = vmatpush.msra.mxu2 %v342_v12  ;;  %v536_v29 = vld [vmem:[%s1838_s11 + $0x318] sm:$0xff]  ;;  %v529_v32 = vld [vmem:[%s1838_s11 + $0x2e0] sm:$0xff]  ;;  %v530_v33 = vld [vmem:[%s1838_s11 + $0x2e8] sm:$0xff] }
  0x41   :  { %255 = vmatpush.msrb.mxu0 %v118_v42  ;;  %275 = vmatpush.msrb.mxu1 %v134_v43  ;;  %v528_v31 = vld [vmem:[%s1838_s11 + $0x2d8] sm:$0xff]  ;;  %v521_v34 = vld [vmem:[%s1838_s11 + $0x2a0] sm:$0xff]  ;;  %v522_v35 = vld [vmem:[%s1838_s11 + $0x2a8] sm:$0xff] }
  0x42   :  { %256 = vmatmul.f32.vlgmr.msrb.gmra.mxu0 %v51_v44  ;;  %276 = vmatmul.f32.vlgmr.msrb.gmra.mxu1 %v52_v45  ;;  %v523_v36 = vld [vmem:[%s1838_s11 + $0x2b0] sm:$0xff]  ;;  %v514_v37 = vld [vmem:[%s1838_s11 + $0x268] sm:$0xff]  ;;  %v516_v39 = vld [vmem:[%s1838_s11 + $0x278] sm:$0xff] }
  0x43   :  { %329 = vmatpush.msrb.mxu3 %v308_v49  ;;  %396 = vmatpush.msrb.mxu2 %v379_v13  ;;  %v515_v38 = vld [vmem:[%s1838_s11 + $0x270] sm:$0xff]  ;;  %v508_v41 = vld [vmem:[%s1838_s11 + $0x238] sm:$0xff]  ;;  %v509_v42 = vld [vmem:[%s1838_s11 + $0x240] sm:$0xff] }
  0x44   :  { %565 = vmatpush.msra.mxu0 %v542_v25  ;;  %585 = vmatpush.msra.mxu1 %v543_v26  ;;  %v507_v40 = vld [vmem:[%s1838_s11 + $0x230] sm:$0xff]  ;;  %v500_v43 = vld [vmem:[%s1838_s11 + $0x1f8] sm:$0xff]  ;;  %v501_v44 = vld [vmem:[%s1838_s11 + $0x200] sm:$0xff] }
  0x45   :  { %330 = vmatpush.msrb.mxu3 %v307_v50  ;;  %397 = vmatpush.msrb.mxu2 %v378_v14  ;;  %v879_v45 = vld [vmem:[%s1833_s6] ss:$0 sm:$0xff]  ;;  %v502_v46 = vld [vmem:[%s1838_s11 + $0x208] sm:$0xff]  ;;  %v495_v50 = vld [vmem:[%s1838_s11 + $0x1d0] sm:$0xff] }
  0x46   :  { %566 = vmatpush.msra.mxu0 %v535_v28  ;;  %586 = vmatpush.msra.mxu1 %v536_v29  ;;  %v493_v47 = vld [vmem:[%s1838_s11 + $0x1c0] sm:$0xff]  ;;  %v494_v48 = vld [vmem:[%s1838_s11 + $0x1c8] sm:$0xff]  ;;  %v459_v9 = vld [vmem:[%s1838_s11 + $0xb0] sm:$0xff] }
  0x47   :  { %331 = vmatpush.msrb.mxu3 %v306_v51  ;;  %398 = vmatpush.msrb.mxu2 %v377_v15  ;;  %v545_v49 = vld [vmem:[%s1838_s11 + $0x360] sm:$0xff]  ;;  %v538_v51 = vld [vmem:[%s1838_s11 + $0x328] sm:$0xff]  ;;  %v460_v11 = vld [vmem:[%s1838_s11 + $0xb8] sm:$0xff] }
  0x48   :  { %567 = vmatpush.msra.mxu0 %v528_v31  ;;  %587 = vmatpush.msra.mxu1 %v529_v32  ;;  %v503_v12 = vld [vmem:[%s1838_s11 + $0x210] sm:$0xff]  ;;  %v452_v14 = vld [vmem:[%s1838_s11 + $0x78] sm:$0xff]  ;;  %v453_v15 = vld [vmem:[%s1838_s11 + $0x80] sm:$0xff] }
  0x49   :  { %332 = vmatpush.msrb.mxu3 %v305_v52  ;;  %399 = vmatpush.msrb.mxu2 %v376_v16  ;;  %v451_v13 = vld [vmem:[%s1838_s11 + $0x70] sm:$0xff]  ;;  %v496_v16 = vld [vmem:[%s1838_s11 + $0x1d8] sm:$0xff]  ;;  %v541_v31 = vld [vmem:[%s1838_s11 + $0x340] sm:$0xff] }
  0x4a   :  { %568 = vmatpush.msra.mxu0 %v521_v34  ;;  %588 = vmatpush.msra.mxu1 %v522_v35  ;;  %v547_v25 = vld [vmem:[%s1838_s11 + $0x370] sm:$0xff]  ;;  %v540_v29 = vld [vmem:[%s1838_s11 + $0x338] sm:$0xff]  ;;  %v534_v35 = vld [vmem:[%s1838_s11 + $0x308] sm:$0xff] }
  0x4b   :  { %333 = vmatpush.msrb.mxu3 %v304_v53  ;;  %v486_v53 = vld [vmem:[%s1838_s11 + $0x188] sm:$0xff]  ;;  %v539_v28 = vld [vmem:[%s1838_s11 + $0x330] sm:$0xff]  ;;  %v532_v32 = vld [vmem:[%s1838_s11 + $0x2f8] sm:$0xff] }
  0x4c   :  { %569 = vmatpush.msra.mxu0 %v514_v37  ;;  %589 = vmatpush.msra.mxu1 %v515_v38  ;;  %v475_v34 = vld [vmem:[%s1838_s11 + $0x130] sm:$0xff]  ;;  %v526_v37 = vld [vmem:[%s1838_s11 + $0x2c8] sm:$0xff] }
  0x4d   :  { %334 = vmatpush.msrb.mxu3 %v303_v54  ;;  %v487_v54 = vld [vmem:[%s1838_s11 + $0x190] sm:$0xff] }
  0x4e   :  { %570 = vmatpush.msra.mxu0 %v507_v40  ;;  %590 = vmatpush.msra.mxu1 %v508_v41  ;;  %v527_v38 = vld [vmem:[%s1838_s11 + $0x2d0] sm:$0xff]  ;;  %v520_v41 = vld [vmem:[%s1838_s11 + $0x298] sm:$0xff] }
  0x4f   :  { %335 = vmatpush.msrb.mxu3 %v302_v55  ;;  %v519_v40 = vld [vmem:[%s1838_s11 + $0x290] sm:$0xff] }
  0x50   :  { %571 = vmatpush.msra.mxu0 %v500_v43  ;;  %591 = vmatpush.msra.mxu1 %v501_v44  ;;  %v512_v43 = vld [vmem:[%s1838_s11 + $0x258] sm:$0xff]  ;;  %v513_v44 = vld [vmem:[%s1838_s11 + $0x260] sm:$0xff] }
  0x51   :  { %336 = vmatpush.msrb.mxu3 %v301_v56  ;;  %v488_v56 = vld [vmem:[%s1838_s11 + $0x198] sm:$0xff] }
  0x52   :  { %572 = vmatpush.msra.mxu0 %v493_v47  ;;  %592 = vmatpush.msra.mxu1 %v494_v48  ;;  %v506_v47 = vld [vmem:[%s1838_s11 + $0x228] sm:$0xff]  ;;  %v468_v48 = vld [vmem:[%s1838_s11 + $0xf8] sm:$0xff] }
  0x53   :  { %625 = vmatpush.msra.mxu3 %v545_v49  ;;  %v497_v49 = vld [vmem:[%s1838_s11 + $0x1e0] sm:$0xff] }
  0x54   :  { %573 = vmatpush.msra.mxu0 %v486_v53  ;;  %593 = vmatpush.msra.mxu1 %v487_v54  ;;  %v490_v53 = vld [vmem:[%s1838_s11 + $0x1a8] sm:$0xff]  ;;  %v491_v54 = vld [vmem:[%s1838_s11 + $0x1b0] sm:$0xff] }
  0x55   :  { %626 = vmatpush.msra.mxu3 %v538_v51  ;;  %v499_v51 = vld [vmem:[%s1838_s11 + $0x1f0] sm:$0xff] }
  0xab   :  { %v177_v58 = vpop.f32.mrf.mxu0 }
  0xac   :  { %v178_v59 = vadd.f32 %v877_v57, %v177_v58  ;;  %v531_v57 = vld [vmem:[%s1838_s11 + $0x2f0] sm:$0xff] }
  0xad   :  { %v197_v60 = vpop.f32.mrf.mxu1  ;;  %v479_v58 = vld [vmem:[%s1838_s11 + $0x150] sm:$0xff]  ;;  %627 = vmatpush.msra.mxu3 %v531_v57 }
  0xae   :  { %v198_v61 = vadd.f32 %v197_v60, %v178_v59  ;;  %v480_v59 = vld [vmem:[%s1838_s11 + $0x158] sm:$0xff]  ;;  %v481_v60 = vld [vmem:[%s1838_s11 + $0x160] sm:$0xff]  ;;  %574 = vmatpush.msra.mxu0 %v479_v58  ;;  %v483_v57 = vld [vmem:[%s1838_s11 + $0x170] sm:$0xff] }
  0xaf   :  { %v217_v62 = vpop.f32.mrf.mxu2  ;;  %594 = vmatpush.msra.mxu1 %v480_v59  ;;  %v484_v58 = vld [vmem:[%s1838_s11 + $0x178] sm:$0xff]  ;;  %v485_v59 = vld [vmem:[%s1838_s11 + $0x180] sm:$0xff] }
  0xb0   :  { %v218_v63 = vadd.f32 %v217_v62, %v198_v61  ;;  %v524_v61 = vld [vmem:[%s1838_s11 + $0x2b8] sm:$0xff] }
  0xb1   :  { %v472_v62 = vld [vmem:[%s1838_s11 + $0x118] sm:$0xff]  ;;  %628 = vmatpush.msra.mxu3 %v524_v61 }
  0xb2   :  { %575 = vmatpush.msra.mxu0 %v472_v62  ;;  %v476_v61 = vld [vmem:[%s1838_s11 + $0x138] sm:$0xff]  ;;  %v477_v62 = vld [vmem:[%s1838_s11 + $0x140] sm:$0xff] }
  0xb3   :  { %v237_v0 = vpop.f32.mrf.mxu3 }
  0xb4   :  { %v238_v1 = vadd.f32 %v237_v0, %v218_v63  ;;  %v473_v63 = vld [vmem:[%s1838_s11 + $0x120] sm:$0xff] }
  0xb5   :  { %v880_v0 = vld [vmem:[%s1835_s8] ss:$0 sm:$0xff]  ;;  %595 = vmatpush.msra.mxu1 %v473_v63  ;;  %v478_v63 = vld [vmem:[%s1838_s11 + $0x148] sm:$0xff] }
  0xb7   :  { %v297_v5 = vpop.f32.mrf.mxu2 }
  0xbf   :  { %v257_v2 = vpop.f32.mrf.mxu0  ;;  %v277_v3 = vpop.f32.mrf.mxu1 }
  0xc0   :  { %v258_v4 = vadd.f32 %v257_v2, %v238_v1  ;;  %v474_v1 = vld [vmem:[%s1838_s11 + $0x128] sm:$0xff]  ;;  %v517_v2 = vld [vmem:[%s1838_s11 + $0x280] sm:$0xff] }
  0xc1   :  { %629 = vmatpush.msra.mxu3 %v517_v2  ;;  %v470_v2 = vld [vmem:[%s1838_s11 + $0x108] sm:$0xff] }
  0xc2   :  { %v278_v6 = vadd.f32 %v277_v3, %v258_v4  ;;  %v465_v3 = vld [vmem:[%s1838_s11 + $0xe0] sm:$0xff]  ;;  %v466_v4 = vld [vmem:[%s1838_s11 + $0xe8] sm:$0xff] }
  0xc3   :  { %576 = vmatpush.msra.mxu0 %v465_v3  ;;  %596 = vmatpush.msra.mxu1 %v466_v4  ;;  %v471_v3 = vld [vmem:[%s1838_s11 + $0x110] sm:$0xff]  ;;  %v462_v4 = vld [vmem:[%s1838_s11 + $0xc8] sm:$0xff] }
  0xc4   :  { %v298_v7 = vadd.f32 %v297_v5, %v278_v6  ;;  %v467_v5 = vld [vmem:[%s1838_s11 + $0xf0] sm:$0xff]  ;;  %v510_v6 = vld [vmem:[%s1838_s11 + $0x248] sm:$0xff] }
  0xc5   :  { %630 = vmatpush.msra.mxu3 %v510_v6  ;;  %597 = vmatpush.msra.mxu1 %v459_v9  ;;  %v464_v6 = vld [vmem:[%s1838_s11 + $0xd8] sm:$0xff]  ;;  %v457_v9 = vld [vmem:[%s1838_s11 + $0xa0] sm:$0xff] }
  0xc6   :  { %882 = vtanh.f32 %v298_v7 }
  0xc7   :  { %631 = vmatpush.msra.mxu3 %v503_v12  ;;  %598 = vmatpush.msra.mxu1 %v452_v14  ;;  %v450_v12 = vld [vmem:[%s1838_s11 + $0x68] sm:$0xff] }
  0xc8   :  { %v442_v14 = vld [vmem:[%s1838_s11 + $0x28] sm:$0xff] }
  0xc9   :  { %632 = vmatpush.msra.mxu3 %v496_v16  ;;  %v881_v16 = vld [vmem:[%s1837_s10] ss:$0 sm:$0xff]  ;;  %s944_s10 = smov [#allocation2]  }
  0xcc   :  { %v883_v8 = vpop.eup %882 }
  0xcd   :  { %337 = vmatmul.f32.vlgmr.msrb.gmra.mxu3 %v883_v8  ;;  %v458_v8 = vld [vmem:[%s1838_s11 + $0xa8] sm:$0xff] }
  0xce   :  { %577 = vmatpush.msra.mxu0 %v458_v8  ;;  %v456_v8 = vld [vmem:[%s1838_s11 + $0x98] sm:$0xff] }
  0xd0   :  { %578 = vmatpush.msra.mxu0 %v451_v13  ;;  %v441_v13 = vld [vmem:[%s1838_s11 + $0x20] sm:$0xff] }
 0x150   :  { %v338_v18 = vpop.f32.mrf.mxu3 }
 0x151   :  { %v339_v19 = vadd.f32 %v878_v17, %v338_v18  ;;  %v444_v17 = vld [vmem:[%s1838_s11 + $0x38] sm:$0xff]  ;;  %v445_v18 = vld [vmem:[%s1838_s11 + $0x40] sm:$0xff] }
 0x152   :  { %579 = vmatpush.msra.mxu0 %v444_v17  ;;  %599 = vmatpush.msra.mxu1 %v445_v18 }
 0x153   :  { %884 = vtanh.f32 %v339_v19  ;;  %v446_v19 = vld [vmem:[%s1838_s11 + $0x48] sm:$0xff] }
 0x159   :  { %v885_v20 = vpop.eup %884 }
 0x15a   :  { %866 = vmatmul.msk.f32.vlgmr.msra.gmra.mxu2 %vm350_vm1, %v885_v20 }
 0x15b   :  { %428 = vmatpush.msra.mxu2 %v408_v21  ;;  %v437_v21 = vld [vmem:[%s1838_s11] sm:$0xff] }
 0x15c   :  { %580 = vmatpush.msra.mxu0 %v437_v21 }
 0x15d   :  { %429 = vmatpush.msra.mxu2 %v407_v22  ;;  %v438_v22 = vld [vmem:[%s1838_s11 + $0x8] sm:$0xff] }
 0x15e   :  { %600 = vmatpush.msra.mxu1 %v438_v22 }
 0x15f   :  { %430 = vmatpush.msra.mxu2 %v406_v23  ;;  %v546_v23 = vld [vmem:[%s1838_s11 + $0x368] sm:$0xff] }
 0x160   :  { %645 = vmatpush.msrb.mxu0 %v546_v23  ;;  %665 = vmatpush.msrb.mxu1 %v547_v25 }
 0x161   :  { %431 = vmatpush.msra.mxu2 %v405_v24  ;;  %v439_v24 = vld [vmem:[%s1838_s11 + $0x10] sm:$0xff] }
 0x162   :  { %867 = vmatmul.msk.f32.vlgmr.msrb.gmra.mxu2 %vm350_vm1, %v885_v20  ;;  %v489_v20 = vld [vmem:[%s1838_s11 + $0x1a0] sm:$0xff]  ;;  %646 = vmatpush.msrb.mxu0 %v539_v28 }
 0x163   :  { %605 = vmatpush.msrb.mxu2 %v544_v27  ;;  %633 = vmatpush.msra.mxu3 %v489_v20  ;;  %v548_v27 = vld [vmem:[%s1838_s11 + $0x378] sm:$0xff]  ;;  %v549_v20 = vld [vmem:[%s1839_s12] sm:$0x7f]  ;;  %s852_s12 = sshll.u32 %s944_s10, 4  ;;  %s853_s12 = int_to_ptr.vmem [resolvable:$true] %s852_s12 }
 0x164   :  { %666 = vmatpush.msrb.mxu1 %v540_v29  ;;  %647 = vmatpush.msrb.mxu0 %v532_v32  ;;  %v551_v21 = vperm.slane %v549_v20, 0  ;;  %v552_v22 = vperm.slane %v549_v20, 1  ;;  %v553_v29 = vperm.slane %v549_v20, 2  ;;  %v556_v32 = vperm.slane %v549_v20, 5 }
 0x165   :  { %606 = vmatpush.msrb.mxu2 %v537_v30  ;;  %v482_v30 = vld [vmem:[%s1838_s11 + $0x168] sm:$0xff] }
 0x166   :  { %634 = vmatpush.msra.mxu3 %v482_v30  ;;  %v554_v30 = vperm.slane %v549_v20, 3 }
 0x167   :  { %607 = vmatpush.msrb.mxu2 %v530_v33  ;;  %v533_v33 = vld [vmem:[%s1838_s11 + $0x300] sm:$0xff] }
 0x168   :  { %667 = vmatpush.msrb.mxu1 %v533_v33  ;;  %635 = vmatpush.msra.mxu3 %v475_v34 }
 0x169   :  { %608 = vmatpush.msrb.mxu2 %v523_v36  ;;  %v525_v36 = vld [vmem:[%s1838_s11 + $0x2c0] sm:$0xff] }
 0x16a   :  { %648 = vmatpush.msrb.mxu0 %v525_v36  ;;  %668 = vmatpush.msrb.mxu1 %v526_v37 }
 0x16b   :  { %609 = vmatpush.msrb.mxu2 %v516_v39  ;;  %v518_v39 = vld [vmem:[%s1838_s11 + $0x288] sm:$0xff]  ;;  %636 = vmatpush.msra.mxu3 %v468_v48 }
 0x16c   :  { %649 = vmatpush.msrb.mxu0 %v518_v39  ;;  %669 = vmatpush.msrb.mxu1 %v519_v40 }
 0x16d   :  { %610 = vmatpush.msrb.mxu2 %v509_v42  ;;  %v511_v42 = vld [vmem:[%s1838_s11 + $0x250] sm:$0xff] }
 0x16e   :  { %650 = vmatpush.msrb.mxu0 %v511_v42  ;;  %670 = vmatpush.msrb.mxu1 %v512_v43 }
 0x16f   :  { %611 = vmatpush.msrb.mxu2 %v502_v46  ;;  %v505_v46 = vld [vmem:[%s1838_s11 + $0x220] sm:$0xff] }
 0x170   :  { %671 = vmatpush.msrb.mxu1 %v505_v46 }
 0x171   :  { %612 = vmatpush.msrb.mxu2 %v495_v50  ;;  %v498_v50 = vld [vmem:[%s1838_s11 + $0x1e8] sm:$0xff] }
 0x172   :  { %672 = vmatpush.msrb.mxu1 %v498_v50 }
 0x173   :  { %613 = vmatpush.msrb.mxu2 %v488_v56  ;;  %v454_v56 = vld [vmem:[%s1838_s11 + $0x88] sm:$0xff] }
 0x174   :  { %673 = vmatpush.msrb.mxu1 %v491_v54 }
 0x175   :  { %614 = vmatpush.msrb.mxu2 %v481_v60  ;;  %v447_v60 = vld [vmem:[%s1838_s11 + $0x50] sm:$0xff] }
 0x176   :  { %674 = vmatpush.msrb.mxu1 %v484_v58 }
 0x177   :  { %615 = vmatpush.msrb.mxu2 %v474_v1  ;;  %v469_v1 = vld [vmem:[%s1838_s11 + $0x100] sm:$0xff] }
 0x178   :  { %675 = vmatpush.msrb.mxu1 %v477_v62 }
 0x179   :  { %616 = vmatpush.msrb.mxu2 %v467_v5  ;;  %v463_v5 = vld [vmem:[%s1838_s11 + $0xd0] sm:$0xff] }
 0x17a   :  { %676 = vmatpush.msrb.mxu1 %v470_v2 }
 0x17b   :  { %617 = vmatpush.msrb.mxu2 %v460_v11  ;;  %v449_v11 = vld [vmem:[%s1838_s11 + $0x60] sm:$0xff] }
 0x17c   :  { %677 = vmatpush.msrb.mxu1 %v463_v5 }
 0x17d   :  { %618 = vmatpush.msrb.mxu2 %v453_v15  ;;  %v443_v15 = vld [vmem:[%s1838_s11 + $0x30] sm:$0xff] }
 0x17e   :  { %678 = vmatpush.msrb.mxu1 %v456_v8 }
 0x17f   :  { %619 = vmatpush.msrb.mxu2 %v446_v19 }
 0x180   :  { %679 = vmatpush.msrb.mxu1 %v449_v11 }
 0x181   :  { %620 = vmatpush.msrb.mxu2 %v439_v24 }
 0x182   :  { %680 = vmatpush.msrb.mxu1 %v442_v14 }
 0x1dd   :  { %v371_v52 = vpop.f32.mrf.mxu2 }
 0x1de   :  { %v372_v55 = vadd.f32 %v879_v45, %v371_v52  ;;  %v504_v45 = vld [vmem:[%s1838_s11 + $0x218] sm:$0xff]  ;;  %v461_v52 = vld [vmem:[%s1838_s11 + $0xc0] sm:$0xff] }
 0x1df   :  { %651 = vmatpush.msrb.mxu0 %v504_v45  ;;  %637 = vmatpush.msra.mxu3 %v461_v52 }
 0x1e0   :  { %375 = vst.msk [vmem:[%s1840_s13] sm:$0xff] %vm374_vm2, %v372_v55  ;;  %v492_v55 = vld [vmem:[%s1838_s11 + $0x1b8] sm:$0xff] }
 0x1e1   :  { %652 = vmatpush.msrb.mxu0 %v497_v49  ;;  %638 = vmatpush.msra.mxu3 %v454_v56 }
 0x1e3   :  { %653 = vmatpush.msrb.mxu0 %v490_v53  ;;  %639 = vmatpush.msra.mxu3 %v447_v60 }
 0x1e5   :  { %v401_v7 = vpop.f32.mrf.mxu2  ;;  %654 = vmatpush.msrb.mxu0 %v483_v57 }
 0x1e6   :  { %v402_v10 = vadd.f32 %v880_v0, %v401_v7  ;;  %v440_v0 = vld [vmem:[%s1838_s11 + $0x18] sm:$0xff]  ;;  %v455_v7 = vld [vmem:[%s1838_s11 + $0x90] sm:$0xff] }
 0x1e7   :  { %655 = vmatpush.msrb.mxu0 %v476_v61  ;;  %640 = vmatpush.msra.mxu3 %v440_v0 }
 0x1e8   :  { %886 = vtanh.f32 %v402_v10  ;;  %v448_v10 = vld [vmem:[%s1838_s11 + $0x58] sm:$0xff] }
 0x1e9   :  { %656 = vmatpush.msrb.mxu0 %v469_v1 }
 0x1eb   :  { %657 = vmatpush.msrb.mxu0 %v462_v4 }
 0x1ed   :  { %658 = vmatpush.msrb.mxu0 %v455_v7 }
 0x1ee   :  { %v887_v26 = vpop.eup %886 }
 0x1ef   :  { %868 = vmatmul.msk.f32.vlgmr.msra.gmra.mxu2 %vm350_vm1, %v887_v26  ;;  %659 = vmatpush.msrb.mxu0 %v448_v10 }
 0x1f0   :  { %685 = vmatpush.msra.mxu2 %v548_v27 }
 0x1f1   :  { %660 = vmatpush.msrb.mxu0 %v441_v13 }
 0x1f2   :  { %686 = vmatpush.msra.mxu2 %v541_v31  ;;  %v555_v31 = vperm.slane %v549_v20, 4 }
 0x1f4   :  { %687 = vmatpush.msra.mxu2 %v534_v35 }
 0x1f6   :  { %688 = vmatpush.msra.mxu2 %v527_v38 }
 0x1f8   :  { %689 = vmatpush.msra.mxu2 %v520_v41 }
 0x1fa   :  { %690 = vmatpush.msra.mxu2 %v513_v44 }
 0x1fc   :  { %691 = vmatpush.msra.mxu2 %v506_v47  ;;  %v557_v47 = vperm.slane %v549_v20, 6 }
 0x1fe   :  { %692 = vmatpush.msra.mxu2 %v499_v51 }
 0x200   :  { %693 = vmatpush.msra.mxu2 %v492_v55 }
 0x202   :  { %694 = vmatpush.msra.mxu2 %v485_v59 }
 0x204   :  { %695 = vmatpush.msra.mxu2 %v478_v63 }
 0x206   :  { %696 = vmatpush.msra.mxu2 %v471_v3 }
 0x208   :  { %697 = vmatpush.msra.mxu2 %v464_v6 }
 0x20a   :  { %698 = vmatpush.msra.mxu2 %v457_v9 }
 0x20c   :  { %699 = vmatpush.msra.mxu2 %v450_v12 }
 0x20e   :  { %700 = vmatpush.msra.mxu2 %v443_v15 }
 0x272   :  { %v433_v17 = vpop.f32.mrf.mxu2 }
 0x273   :  { %v434_v18 = vadd.f32 %v881_v16, %v433_v17 }
 0x275   :  { %888 = vtanh.f32 %v434_v18 }
 0x27b   :  { %v889_v19 = vpop.eup %888 }
 0x27c   :  { %581 = vmatmul.f32.vlgmr.msra.gmra.mxu0 %v889_v19  ;;  %601 = vmatmul.f32.vlgmr.msra.gmra.mxu1 %v889_v19 }
 0x27d   :  { %621 = vmatmul.f32.vlgmr.msrb.gmra.mxu2 %v889_v19  ;;  %641 = vmatmul.f32.vlgmr.msra.gmra.mxu3 %v889_v19 }
 0x284   :  { %661 = vmatmul.f32.vlgmr.msrb.gmra.mxu0 %v889_v19  ;;  %681 = vmatmul.f32.vlgmr.msrb.gmra.mxu1 %v889_v19 }
 0x285   :  { %701 = vmatmul.f32.vlgmr.msra.gmra.mxu2 %v889_v19 }
 0x2f9   :  { %v582_v23 = vpop.f32.mrf.mxu0  ;;  %v602_v24 = vpop.f32.mrf.mxu1 }
 0x2fa   :  { %v583_v25 = vadd.f32 %v582_v23, %v551_v21  ;;  %v603_v26 = vadd.f32 %v602_v24, %v552_v22 }
 0x2fc   :  { %v869_v27 = vmul.f32 -1.442695, %v583_v25  ;;  %v870_v28 = vmul.f32 -1.442695, %v603_v26 }
 0x2fe   :  { %890 = vpow2.f32 %v869_v27 }
 0x2ff   :  { %892 = vpow2.f32 %v870_v28 }
 0x300   :  { %v622_v33 = vpop.f32.mrf.mxu2  ;;  %v642_v34 = vpop.f32.mrf.mxu3 }
 0x301   :  { %v623_v35 = vadd.f32 %v622_v33, %v553_v29  ;;  %v643_v36 = vadd.f32 %v642_v34, %v554_v30  ;;  %v662_v37 = vpop.f32.mrf.mxu0  ;;  %v682_v38 = vpop.f32.mrf.mxu1 }
 0x302   :  { %v663_v39 = vadd.f32 %v662_v37, %v555_v31  ;;  %v683_v40 = vadd.f32 %v682_v38, %v556_v32 }
 0x303   :  { %v871_v41 = vmul.f32 -1.442695, %v623_v35  ;;  %v872_v42 = vmul.f32 -1.442695, %v643_v36 }
 0x304   :  { %v891_v43 = vpop.eup %890  ;;  %v873_v46 = vmul.f32 -1.442695, %v663_v39  ;;  %v874_v49 = vmul.f32 -1.442695, %v683_v40 }
 0x305   :  { %v893_v44 = vpop.eup %892  ;;  %v726_v45 = vadd.f32 1.0, %v891_v43  ;;  %894 = vpow2.f32 %v871_v41 }
 0x306   :  { %v727_v48 = vadd.f32 1.0, %v893_v44  ;;  %896 = vpow2.f32 %v872_v42 }
 0x307   :  { %898 = vrcp.f32 %v726_v45  ;;  %v742_v0 = vand.u32 2147483647, %v726_v45  ;;  %v744_v1 = vand.u32 2147483648, %v726_v45  ;;  %vm738_vm5 = vweird.f32 %v726_v45 }
 0x308   :  { %900 = vrcp.f32 %v727_v48  ;;  %v702_v50 = vpop.f32.mrf.mxu2  ;;  %v757_v3 = vand.u32 2147483647, %v727_v48  ;;  %v759_v4 = vand.u32 2147483648, %v727_v48  ;;  %vm753_vm6 = vweird.f32 %v727_v48 }
 0x309   :  { %902 = vpow2.f32 %v873_v46  ;;  %v703_v51 = vadd.f32 %v702_v50, %v557_v47  ;;  %vm743_vm8 = vcmp.eq.f32.partialorder %v742_v0, 8.507059e+37  ;;  %v745_v12 = vor.u32 1.1754944e-38, %v744_v1 }
 0x30a   :  { %904 = vpow2.f32 %v874_v49  ;;  %vm758_vm10 = vcmp.eq.f32.partialorder %v757_v3, 8.507059e+37  ;;  %v760_v17 = vor.u32 1.1754944e-38, %v759_v4 }
 0x30b   :  { %v895_v52 = vpop.eup %894  ;;  %v875_v53 = vmul.f32 -1.442695, %v703_v51 }
 0x30c   :  { %v897_v54 = vpop.eup %896  ;;  %v1780_v55 = vadd.f32 1.0, %v895_v52 }
 0x30d   :  { %v899_v56 = vpop.eup %898  ;;  %v1782_v57 = vadd.f32 1.0, %v897_v54 }
 0x30e   :  { %v901_v58 = vpop.eup %900  ;;  %v734_v59 = vmul.f32 %v899_v56, %v726_v45  ;;  %906 = vrcp.f32 %v1780_v55  ;;  %vm739_vm3 = vweird.f32 %v899_v56  ;;  %v772_v23 = vand.u32 2147483647, %v1780_v55 }
 0x30f   :  { %v903_v60 = vpop.eup %902  ;;  %v749_v61 = vmul.f32 %v901_v58, %v727_v48  ;;  %908 = vpow2.f32 %v875_v53  ;;  %vm754_vm4 = vweird.f32 %v901_v58  ;;  %vm740_vm7 = vmor %vm738_vm5, %vm739_vm3  ;;  %v774_v24 = vand.u32 2147483648, %v1780_v55 }
 0x310   :  { %v905_v62 = vpop.eup %904  ;;  %v735_v63 = vsub.f32 1.0, %v734_v59  ;;  %910 = vrcp.f32 %v1782_v57  ;;  %v1786_v6 = vadd.f32 1.0, %v903_v60  ;;  %vm755_vm9 = vmor %vm753_vm6, %vm754_vm4  ;;  %v787_v25 = vand.u32 2147483647, %v1782_v57 }
 0x311   :  { %v750_v2 = vsub.f32 1.0, %v749_v61  ;;  %v1788_v7 = vadd.f32 1.0, %v905_v62  ;;  %vm768_vm12 = vweird.f32 %v1780_v55  ;;  %vm783_vm13 = vweird.f32 %v1782_v57 }
 0x312   :  { %v736_v5 = vmul.f32 %v899_v56, %v735_v63  ;;  %912 = vrcp.f32 %v1786_v6  ;;  %v789_v30 = vand.u32 2147483648, %v1782_v57  ;;  %vm773_vm1 = vcmp.eq.f32.partialorder %v772_v23, 8.507059e+37 }
 0x313   :  { %v751_v8 = vmul.f32 %v901_v58, %v750_v2  ;;  %914 = vrcp.f32 %v1788_v7  ;;  %v775_v35 = vor.u32 1.1754944e-38, %v774_v24  ;;  %vm1803_vm2 = vcmp.eq.f32.partialorder %v787_v25, 8.507059e+37 }
 0x314   :  { %v907_v9 = vpop.eup %906  ;;  %v737_v10 = vadd.f32 %v899_v56, %v736_v5  ;;  %v790_v42 = vor.u32 1.1754944e-38, %v789_v30  ;;  %v802_v43 = vand.u32 2147483647, %v1786_v6  ;;  %v804_v44 = vand.u32 2147483648, %v1786_v6 }
 0x315   :  { %v909_v11 = vpop.eup %908  ;;  %v752_v13 = vadd.f32 %v901_v58, %v751_v8  ;;  %v764_v14 = vmul.f32 %v907_v9, %v1780_v55  ;;  %vm769_vm11 = vweird.f32 %v907_v9  ;;  %vm798_vm5 = vweird.f32 %v1786_v6 }
 0x316   :  { %v911_v15 = vpop.eup %910  ;;  %v741_v16 = vsel %vm740_vm7, %v899_v56, %v737_v10  ;;  %v1797_v28 = vadd.f32 1.0, %v909_v11  ;;  %vm770_vm15 = vmor %vm768_vm12, %vm769_vm11  ;;  %v819_v49 = vand.u32 2147483648, %v1788_v7  ;;  %v817_v52 = vand.u32 2147483647, %v1788_v7 }
 0x317   :  { %v746_v18 = vsel %vm743_vm8, %v745_v12, %v741_v16  ;;  %v756_v19 = vsel %vm755_vm9, %v901_v58, %v752_v13  ;;  %v765_v20 = vsub.f32 1.0, %v764_v14  ;;  %v779_v21 = vmul.f32 %v911_v15, %v1782_v57 }
 0x318   :  { %838 = vst [vmem:[#allocation2] sm:$0xff] %v746_v18  ;;  %v761_v22 = vsel %vm758_vm10, %v760_v17, %v756_v19  ;;  %v913_v29 = vpop.eup %912  ;;  %vm784_vm14 = vweird.f32 %v911_v15  ;;  %916 = vrcp.f32 %v1797_v28  ;;  %vm803_vm8 = vcmp.eq.f32.partialorder %v802_v43, 8.507059e+37 }
 0x319   :  { %839 = vst [vmem:[#allocation2 + $0x8] sm:$0xff] %v761_v22  ;;  %v766_v26 = vmul.f32 %v907_v9, %v765_v20  ;;  %v780_v27 = vsub.f32 1.0, %v779_v21  ;;  %v794_v33 = vmul.f32 %v913_v29, %v1786_v6  ;;  %v915_v34 = vpop.eup %914  ;;  %vm785_vm3 = vmor %vm783_vm13, %vm784_vm14  ;;  %vm799_vm4 = vweird.f32 %v913_v29 }
 0x31a   :  { %v809_v40 = vmul.f32 %v915_v34, %v1788_v7  ;;  %vm814_vm6 = vweird.f32 %v915_v34  ;;  %vm800_vm7 = vmor %vm798_vm5, %vm799_vm4  ;;  %v805_v54 = vor.u32 1.1754944e-38, %v804_v44  ;;  %vm813_vm9 = vweird.f32 %v1788_v7 }
 0x31b   :  { %v767_v31 = vadd.f32 %v907_v9, %v766_v26  ;;  %v781_v32 = vmul.f32 %v911_v15, %v780_v27  ;;  %v795_v39 = vsub.f32 1.0, %v794_v33  ;;  %vm815_vm10 = vmor %vm813_vm9, %vm814_vm6  ;;  %v820_v59 = vor.u32 1.1754944e-38, %v819_v49 }
 0x31c   :  { %v810_v47 = vsub.f32 1.0, %v809_v40  ;;  %vm818_vm11 = vcmp.eq.f32.partialorder %v817_v52, 8.507059e+37  ;;  %v834_v63 = vand.u32 2147483648, %v1797_v28  ;;  %v832_v1 = vand.u32 2147483647, %v1797_v28 }
 0x31d   :  { %v771_v37 = vsel %vm770_vm15, %v907_v9, %v767_v31  ;;  %v782_v38 = vadd.f32 %v911_v15, %v781_v32  ;;  %v796_v46 = vmul.f32 %v913_v29, %v795_v39  ;;  %vm828_vm13 = vweird.f32 %v1797_v28 }
 0x31e   :  { %v776_v41 = vsel %vm773_vm1, %v775_v35, %v771_v37  ;;  %v811_v51 = vmul.f32 %v915_v34, %v810_v47  ;;  %v917_v53 = vpop.eup %916  ;;  %v835_v3 = vor.u32 1.1754944e-38, %v834_v63  ;;  %vm833_vm15 = vcmp.eq.f32.partialorder %v832_v1, 8.507059e+37 }
 0x31f   :  { %840 = vst [vmem:[#allocation2 + $0x10] sm:$0xff] %v776_v41  ;;  %v786_v45 = vsel %vm785_vm3, %v911_v15, %v782_v38  ;;  %v797_v50 = vadd.f32 %v913_v29, %v796_v46  ;;  %v824_v57 = vmul.f32 %v917_v53, %v1797_v28  ;;  %vm829_vm12 = vweird.f32 %v917_v53 }
 0x320   :  { %v791_v48 = vsel %vm1803_vm2, %v790_v42, %v786_v45  ;;  %v812_v56 = vadd.f32 %v915_v34, %v811_v51  ;;  %vm830_vm14 = vmor %vm828_vm13, %vm829_vm12 }
 0x321   :  { %841 = vst [vmem:[#allocation2 + $0x18] sm:$0xff] %v791_v48  ;;  %v801_v55 = vsel %vm800_vm7, %v913_v29, %v797_v50  ;;  %v825_v61 = vsub.f32 1.0, %v824_v57 }
 0x322   :  { %v806_v58 = vsel %vm803_vm8, %v805_v54, %v801_v55  ;;  %v816_v60 = vsel %vm815_vm10, %v915_v34, %v812_v56 }
 0x323   :  { %842 = vst [vmem:[#allocation2 + $0x20] sm:$0xff] %v806_v58  ;;  %v821_v62 = vsel %vm818_vm11, %v820_v59, %v816_v60  ;;  %v826_v0 = vmul.f32 %v917_v53, %v825_v61 }
 0x324   :  { %843 = vst [vmem:[#allocation2 + $0x28] sm:$0xff] %v821_v62 }
 0x325   :  { %v827_v2 = vadd.f32 %v917_v53, %v826_v0 }
 0x327   :  { %v831_v4 = vsel %vm830_vm14, %v917_v53, %v827_v2 }
 0x328   :  { %v836_v5 = vsel %vm833_vm15, %v835_v3, %v831_v4 }
 0x329   :  { %844 = vst.msk [vmem:[#allocation2 + $0x30] sm:$0xff] %vm156_vm0, %v836_v5 }
 0x32a   :  { %857 = dma.vmem_to_hbm [thread:$0]  %s853_s12, 896, %s855_s30, [#allocation3]  }
 0x32b   :  { %942 = dma.done.wait [#allocation3], 896  }
 0x32c   :  { %943 = vsyncadd [#allocation3], 4294966400 }
 0x32d   :  { %864 = vsyncpa [#allocation3], 1 }

</bundles_post_ra>
